<compile_context>
chip_gen: v5e
topology: v5e:2x2
jax: 0.10.0
libtpu: 0.0.40
codegen_flags: <defaults>
</compile_context>

<pallas_src>
import functools

import numpy as np
import jax
import jax.numpy as jnp
from jax.experimental import pallas as pl
from jax.experimental.pallas import tpu as pltpu


def _round_up(x, m):
    return (x + m - 1) // m * m


def _pick_tile_h(h, w, c, pad, itemsize, batch, budget_bytes):
    """Largest H-stripe (multiple of 8 dividing H, or H itself) whose estimated
    working set fits `budget_bytes`, preferring enough grid programs for megacore."""
    w2 = _round_up(w + 2 * pad, 128)

    def est(th):
        hp8 = _round_up(th + 2 * pad, 8)
        in_b = 2 * c * (th + 2 * pad) * w * itemsize      # double-buffered inputs (+halo)
        out_b = 2 * th * w * itemsize                     # double-buffered output
        scr = hp8 * w2 * itemsize                         # scratch buffer
        tmp = 4 * hp8 * w2 * itemsize                     # roll/min temporaries headroom
        return in_b + out_b + scr + tmp

    cands = [d for d in range(8, h + 1, 8) if h % d == 0]
    if h not in cands:
        cands.append(h)
    feasible = [t for t in cands if est(t) <= budget_bytes]
    if not feasible:
        return min(cands)
    # Prefer tiles that give at least ~4 grid programs (v7x megacore balance when B small).
    good = [t for t in feasible if (h // t) * batch >= 4]
    return max(good) if good else max(feasible)


def _dark_channel_kernel(x_ref, halo_ref, o_ref, buf_ref, *, c, pad, w, w2, tile_h, hp8):
    hp = tile_h + 2 * pad

    # ---- channel min over the small leading C dim (elementwise) ----
    cm_main = x_ref[0, 0]                       # (tile_h, w)
    cm_halo = halo_ref[0, 0, 0]                 # (2*pad, w)
    for ch in range(1, c):
        cm_main = jnp.minimum(cm_main, x_ref[0, ch])
        cm_halo = jnp.minimum(cm_halo, halo_ref[0, ch, 0])

    # ---- assemble lane-aligned scratch: [top halo | main | bottom halo | +inf] rows,
    #      and a +inf column gap; +inf padding == reflect padding for a windowed min ----
    buf_ref[0:pad, 0:w] = cm_halo[0:pad, :]
    buf_ref[pad:pad + tile_h, 0:w] = cm_main
    buf_ref[pad + tile_h:hp, 0:w] = cm_halo[pad:2 * pad, :]
    if hp8 > hp:
        buf_ref[hp:hp8, 0:w] = jnp.full((hp8 - hp, w), jnp.inf, dtype=buf_ref.dtype)
    buf_ref[:, w:w2] = jnp.full((hp8, w2 - w), jnp.inf, dtype=buf_ref.dtype)

    # ---- W window-min (radius pad): log-depth symmetric lane rolls (XLU) on the
    #      cyclic +inf-padded buffer; sign of the roll convention is irrelevant ----
    t = buf_ref[...]                            # (hp8, w2)
    r = 0
    while r < pad:
        d = min(2 * r + 1, pad - r)
        t = jnp.minimum(t, jnp.minimum(pltpu.roll(t, d, axis=1),
                                       pltpu.roll(t, w2 - d, axis=1)))
        r += d

    # ---- H window-min (radius pad): log-depth forward tree on sublane slices of
    #      the value (no scratch round-trip); row j ends up covering rows j..j+2*pad ----
    r = 0
    while r < pad:
        d = min(2 * r + 1, pad - r)
        n = t.shape[0]
        t = jnp.minimum(t[0:n - 2 * d, :], jnp.minimum(t[d:n - d, :], t[2 * d:n, :]))
        r += d

    o_ref[0] = t[0:tile_h, 0:w]                 # aligned, lane-dense output store


def dark_channel(image, kernel_size):
    """Dark channel: min over RGB and a kernel_size x kernel_size reflect-padded window.
    image: (B, C, H, W) -> (B, H, W). Single fused Pallas pass."""
    b, c, h, w = image.shape
    assert kernel_size % 2 == 1 and kernel_size >= 3, "odd kernel_size >= 3 expected"
    pad = kernel_size // 2
    itemsize = jnp.dtype(image.dtype).itemsize

    tile_h = _pick_tile_h(h, w, c, pad, itemsize, b, budget_bytes=28 * 1024 * 1024)
    ns = h // tile_h
    w2 = _round_up(w + 2 * pad, 128)
    hp8 = _round_up(tile_h + 2 * pad, 8)

    # Halo rows for each stripe (edge-clamped == reflect for a window min); tiny
    # XLA gather (2*pad rows per stripe) so Blocked BlockSpecs need no overlap.
    starts = np.arange(ns) * tile_h
    top = starts[:, None] + np.arange(-pad, 0)[None, :]
    bot = starts[:, None] + tile_h + np.arange(pad)[None, :]
    halo_rows = np.clip(np.concatenate([top, bot], axis=1), 0, h - 1).reshape(-1)
    halos = jnp.take(image, jnp.asarray(halo_rows), axis=2).reshape(b, c, ns, 2 * pad, w)

    kernel = functools.partial(_dark_channel_kernel, c=c, pad=pad, w=w, w2=w2,
                               tile_h=tile_h, hp8=hp8)
    return pl.pallas_call(
        kernel,
        out_shape=jax.ShapeDtypeStruct((b, h, w), image.dtype),
        grid=(b, ns),
        in_specs=[
            pl.BlockSpec((1, c, tile_h, w), lambda bi, hi: (bi, 0, hi, 0)),
            pl.BlockSpec((1, c, 1, 2 * pad, w), lambda bi, hi: (bi, 0, hi, 0, 0)),
        ],
        out_specs=pl.BlockSpec((1, tile_h, w), lambda bi, hi: (bi, hi, 0)),
        scratch_shapes=[pltpu.VMEM((hp8, w2), image.dtype)],
        compiler_params=pltpu.CompilerParams(
            dimension_semantics=("parallel", "parallel"),
            vmem_limit_bytes=48 * 1024 * 1024,
        ),
    )(image, halos)


def dark_channel_prior(image, kernel_size=7, top_sample_ratio=0.009, open_threshold=True):
    """JAX/Pallas equivalent of DarkChannelPrior.forward; image: (B, 3, H, W) f32 -> scalar A."""
    b, c, h, w = image.shape
    dc = dark_channel(image, kernel_size)                     # (B, H, W)
    dc_flat = dc.reshape(b, h * w)                            # row-major == unfold order

    # TODO(synk): top-k selection + gather for the airlight kept as XLA glue (no clean
    # Pallas TPU sort/top-k primitive); for large images this could be replaced by an
    # in-kernel per-tile threshold + masked per-channel max pass.
    top_k = max(int(h * w * top_sample_ratio), 1)             # clamp for tiny images
    _, idx = jax.lax.top_k(dc_flat, top_k)                    # (B, k)

    image_flat = image.reshape(b, c, h * w)
    idx3 = jnp.broadcast_to(idx[:, None, :], (b, c, top_k))
    value = jnp.take_along_axis(image_flat, idx3, axis=2)     # (B, C, k)
    airlight = jnp.max(value, axis=-1)                        # (B, C)
    if open_threshold:
        airlight = jnp.minimum(airlight, 0.89)
    A = airlight.sum() / b / 3
    return A


def _dark_channel_reference(image, ksize):
    """Pure-JAX reference of the torch forward's dark channel (ReflectionPad2d + Unfold + min)."""
    pad = ksize // 2
    ip = jnp.pad(image, ((0, 0), (0, 0), (pad, pad), (pad, pad)), mode="reflect")
    cmin = jnp.min(ip, axis=1)
    return jax.lax.reduce_window(cmin, jnp.array(jnp.inf, image.dtype), jax.lax.min,
                                 (1, ksize, ksize), (1, 1, 1), "VALID")


if __name__ == "__main__":
    key = jax.random.PRNGKey(0)
    # Small RGB batch consistent with the module: B=2, C=3, H=W=16.
    imgs = jax.random.uniform(key, (2, 3, 16, 16), dtype=jnp.float32)

    dc = jax.block_until_ready(dark_channel(imgs, 7))
    dc_ref = _dark_channel_reference(imgs, 7)
    assert dc.shape == (2, 16, 16)
    assert jnp.allclose(dc, dc_ref), "dark channel mismatch vs reference"

    A = jax.block_until_ready(dark_channel_prior(imgs, kernel_size=7, top_sample_ratio=0.009))
    assert A.shape == () and A.dtype == jnp.float32
    print("KERNEL_OK")
</pallas_src>

<mosaic_0001>
module attributes {stable_mosaic.version = 11 : i64} {
  func.func @_dark_channel_kernel(%arg0: i32, %arg1: i32, %arg2: memref<1x3x8x16xf32, #tpu.memory_space<vmem>>, %arg3: memref<1x3x1x6x16xf32, #tpu.memory_space<vmem>>, %arg4: memref<1x8x16xf32, #tpu.memory_space<vmem>>, %arg5: memref<16x128xf32, #tpu.memory_space<vmem>>) attributes {dimension_semantics = [#tpu.dimension_semantics<parallel>, #tpu.dimension_semantics<parallel>], iteration_bounds = array<i64: 2, 2>, scalar_prefetch = 0 : i64, scratch_operands = 1 : i64, tpu.core_type = #tpu.core_type<tc>, window_params = [{transform_indices = @transform_0, window_bounds = array<i64: 1, 3, 8, 16>}, {transform_indices = @transform_1, window_bounds = array<i64: 1, 3, 1, 6, 16>}, {transform_indices = @transform_2, window_bounds = array<i64: 1, 8, 16>}]} {
    %c0 = arith.constant 0 : index
    %c0_0 = arith.constant 0 : index
    %c0_1 = arith.constant 0 : index
    %c0_2 = arith.constant 0 : index
    %0 = vector.load %arg2[%c0, %c0_0, %c0_1, %c0_2] : memref<1x3x8x16xf32, #tpu.memory_space<vmem>>, vector<1x1x8x16xf32>
    %1 = vector.shape_cast %0 : vector<1x1x8x16xf32> to vector<8x16xf32>
    %c0_3 = arith.constant 0 : index
    %c0_4 = arith.constant 0 : index
    %c0_5 = arith.constant 0 : index
    %c0_6 = arith.constant 0 : index
    %c0_7 = arith.constant 0 : index
    %2 = vector.load %arg3[%c0_3, %c0_4, %c0_5, %c0_6, %c0_7] : memref<1x3x1x6x16xf32, #tpu.memory_space<vmem>>, vector<1x1x1x6x16xf32>
    %3 = vector.shape_cast %2 : vector<1x1x1x6x16xf32> to vector<6x16xf32>
    %c0_8 = arith.constant 0 : index
    %c1 = arith.constant 1 : index
    %c0_9 = arith.constant 0 : index
    %c0_10 = arith.constant 0 : index
    %4 = vector.load %arg2[%c0_8, %c1, %c0_9, %c0_10] : memref<1x3x8x16xf32, #tpu.memory_space<vmem>>, vector<1x1x8x16xf32>
    %5 = vector.shape_cast %4 : vector<1x1x8x16xf32> to vector<8x16xf32>
    %6 = arith.minimumf %1, %5 : vector<8x16xf32>
    %c0_11 = arith.constant 0 : index
    %c1_12 = arith.constant 1 : index
    %c0_13 = arith.constant 0 : index
    %c0_14 = arith.constant 0 : index
    %c0_15 = arith.constant 0 : index
    %7 = vector.load %arg3[%c0_11, %c1_12, %c0_13, %c0_14, %c0_15] : memref<1x3x1x6x16xf32, #tpu.memory_space<vmem>>, vector<1x1x1x6x16xf32>
    %8 = vector.shape_cast %7 : vector<1x1x1x6x16xf32> to vector<6x16xf32>
    %9 = arith.minimumf %3, %8 : vector<6x16xf32>
    %c0_16 = arith.constant 0 : index
    %c2 = arith.constant 2 : index
    %c0_17 = arith.constant 0 : index
    %c0_18 = arith.constant 0 : index
    %10 = vector.load %arg2[%c0_16, %c2, %c0_17, %c0_18] : memref<1x3x8x16xf32, #tpu.memory_space<vmem>>, vector<1x1x8x16xf32>
    %11 = vector.shape_cast %10 : vector<1x1x8x16xf32> to vector<8x16xf32>
    %12 = arith.minimumf %6, %11 : vector<8x16xf32>
    %c0_19 = arith.constant 0 : index
    %c2_20 = arith.constant 2 : index
    %c0_21 = arith.constant 0 : index
    %c0_22 = arith.constant 0 : index
    %c0_23 = arith.constant 0 : index
    %13 = vector.load %arg3[%c0_19, %c2_20, %c0_21, %c0_22, %c0_23] : memref<1x3x1x6x16xf32, #tpu.memory_space<vmem>>, vector<1x1x1x6x16xf32>
    %14 = vector.shape_cast %13 : vector<1x1x1x6x16xf32> to vector<6x16xf32>
    %15 = arith.minimumf %9, %14 : vector<6x16xf32>
    %16 = vector.extract_strided_slice %15 {offsets = [0, 0], sizes = [3, 16], strides = [1, 1]} : vector<6x16xf32> to vector<3x16xf32>
    %c0_24 = arith.constant 0 : index
    %c0_25 = arith.constant 0 : index
    %17 = vector.load %arg5[%c0_24, %c0_25] : memref<16x128xf32, #tpu.memory_space<vmem>>, vector<3x16xf32>
    tpu.vector_store %arg5[%c0_24, %c0_25], %16 {strides = array<i32>} : memref<16x128xf32, #tpu.memory_space<vmem>>, vector<3x16xf32>,
    %c3 = arith.constant 3 : index
    %c0_26 = arith.constant 0 : index
    %18 = vector.load %arg5[%c3, %c0_26] : memref<16x128xf32, #tpu.memory_space<vmem>>, vector<8x16xf32>
    tpu.vector_store %arg5[%c3, %c0_26], %12 {strides = array<i32>} : memref<16x128xf32, #tpu.memory_space<vmem>>, vector<8x16xf32>,
    %19 = vector.extract_strided_slice %15 {offsets = [3, 0], sizes = [3, 16], strides = [1, 1]} : vector<6x16xf32> to vector<3x16xf32>
    %c11 = arith.constant 11 : index
    %c0_27 = arith.constant 0 : index
    %20 = vector.load %arg5[%c11, %c0_27] : memref<16x128xf32, #tpu.memory_space<vmem>>, vector<3x16xf32>
    tpu.vector_store %arg5[%c11, %c0_27], %19 {strides = array<i32>} : memref<16x128xf32, #tpu.memory_space<vmem>>, vector<3x16xf32>,
    %cst = arith.constant 0x7F800000 : f32
    %21 = vector.broadcast %cst : f32 to vector<2x16xf32>
    %c14 = arith.constant 14 : index
    %c0_28 = arith.constant 0 : index
    %22 = vector.load %arg5[%c14, %c0_28] : memref<16x128xf32, #tpu.memory_space<vmem>>, vector<2x16xf32>
    tpu.vector_store %arg5[%c14, %c0_28], %21 {strides = array<i32>} : memref<16x128xf32, #tpu.memory_space<vmem>>, vector<2x16xf32>,
    %cst_29 = arith.constant 0x7F800000 : f32
    %23 = vector.broadcast %cst_29 : f32 to vector<16x112xf32>
    %c0_30 = arith.constant 0 : index
    %c16 = arith.constant 16 : index
    %24 = vector.load %arg5[%c0_30, %c16] : memref<16x128xf32, #tpu.memory_space<vmem>>, vector<16x112xf32>
    tpu.vector_store %arg5[%c0_30, %c16], %23 {strides = array<i32>} : memref<16x128xf32, #tpu.memory_space<vmem>>, vector<16x112xf32>,
    %c0_31 = arith.constant 0 : index
    %c0_32 = arith.constant 0 : index
    %25 = vector.load %arg5[%c0_31, %c0_32] : memref<16x128xf32, #tpu.memory_space<vmem>>, vector<16x128xf32>
    %c1_i32 = arith.constant 1 : i32
    %26 = tpu.dynamic_rotate %25 by %c1_i32 dim 1 : vector<16x128xf32>, i32 -> vector<16x128xf32>
    %c127_i32 = arith.constant 127 : i32
    %27 = tpu.dynamic_rotate %25 by %c127_i32 dim 1 : vector<16x128xf32>, i32 -> vector<16x128xf32>
    %28 = arith.minimumf %26, %27 : vector<16x128xf32>
    %29 = arith.minimumf %25, %28 : vector<16x128xf32>
    %c2_i32 = arith.constant 2 : i32
    %30 = tpu.dynamic_rotate %29 by %c2_i32 dim 1 : vector<16x128xf32>, i32 -> vector<16x128xf32>
    %c126_i32 = arith.constant 126 : i32
    %31 = tpu.dynamic_rotate %29 by %c126_i32 dim 1 : vector<16x128xf32>, i32 -> vector<16x128xf32>
    %32 = arith.minimumf %30, %31 : vector<16x128xf32>
    %33 = arith.minimumf %29, %32 : vector<16x128xf32>
    %34 = vector.extract_strided_slice %33 {offsets = [0, 0], sizes = [14, 128], strides = [1, 1]} : vector<16x128xf32> to vector<14x128xf32>
    %35 = vector.extract_strided_slice %33 {offsets = [1, 0], sizes = [14, 128], strides = [1, 1]} : vector<16x128xf32> to vector<14x128xf32>
    %36 = vector.extract_strided_slice %33 {offsets = [2, 0], sizes = [14, 128], strides = [1, 1]} : vector<16x128xf32> to vector<14x128xf32>
    %37 = arith.minimumf %35, %36 : vector<14x128xf32>
    %38 = arith.minimumf %34, %37 : vector<14x128xf32>
    %39 = vector.extract_strided_slice %38 {offsets = [0, 0], sizes = [10, 128], strides = [1, 1]} : vector<14x128xf32> to vector<10x128xf32>
    %40 = vector.extract_strided_slice %38 {offsets = [2, 0], sizes = [10, 128], strides = [1, 1]} : vector<14x128xf32> to vector<10x128xf32>
    %41 = vector.extract_strided_slice %38 {offsets = [4, 0], sizes = [10, 128], strides = [1, 1]} : vector<14x128xf32> to vector<10x128xf32>
    %42 = arith.minimumf %40, %41 : vector<10x128xf32>
    %43 = arith.minimumf %39, %42 : vector<10x128xf32>
    %44 = vector.extract_strided_slice %43 {offsets = [0, 0], sizes = [8, 16], strides = [1, 1]} : vector<10x128xf32> to vector<8x16xf32>
    %c0_33 = arith.constant 0 : index
    %c0_34 = arith.constant 0 : index
    %c0_35 = arith.constant 0 : index
    %45 = vector.load %arg4[%c0_33, %c0_34, %c0_35] : memref<1x8x16xf32, #tpu.memory_space<vmem>>, vector<1x8x16xf32>
    %46 = vector.shape_cast %45 : vector<1x8x16xf32> to vector<8x16xf32>
    %47 = vector.shape_cast %44 : vector<8x16xf32> to vector<1x8x16xf32>
    tpu.vector_store %arg4[%c0_33, %c0_34, %c0_35], %47 {strides = array<i32>} : memref<1x8x16xf32, #tpu.memory_space<vmem>>, vector<1x8x16xf32>,
    return
  }
  func.func @transform_0(%arg0: i32, %arg1: i32) -> (i32, i32, i32, i32) {
    %c0_i32 = arith.constant 0 : i32
    %c0_i32_0 = arith.constant 0 : i32
    %c0_i32_1 = arith.constant 0 : i32
    return %arg0, %c0_i32, %arg1, %c0_i32_0 : i32, i32, i32, i32
  }
  func.func @transform_1(%arg0: i32, %arg1: i32) -> (i32, i32, i32, i32, i32) {
    %c0_i32 = arith.constant 0 : i32
    %c0_i32_0 = arith.constant 0 : i32
    %c0_i32_1 = arith.constant 0 : i32
    %c0_i32_2 = arith.constant 0 : i32
    return %arg0, %c0_i32, %arg1, %c0_i32_0, %c0_i32_1 : i32, i32, i32, i32, i32
  }
  func.func @transform_2(%arg0: i32, %arg1: i32) -> (i32, i32, i32) {
    %c0_i32 = arith.constant 0 : i32
    %c0_i32_0 = arith.constant 0 : i32
    return %arg0, %arg1, %c0_i32 : i32, i32, i32
  }
}

</mosaic_0001>

<bundles_post_ra>
// kernel: tpu_custom_call.1
= control target key start
LH: loop header
LB: loop body
LE: loop exit
PB: predicated region body
PF: predicated region fallthrough
CT: control target
= control target key end

     0   :  { %7 = vsyncpa [#allocation6], 0  ;;  %s834_s0 = inlined_call_operand.vmem [shape: f32[2,3,16,16], index: 0, kind: input, shape index: {}]   ;;  %s835_s1 = inlined_call_operand.vmem [shape: f32[2,3,2,6,16], index: 1, kind: input, shape index: {}]   ;;  %s836_s2 = inlined_call_operand.hbm [shape: f32[2,16,16], index: 2, kind: output, shape index: {}]  }
   0x1   :  { %9 = vsyncpa [#allocation6 + $0x1], 0  ;;  %s690_s9 = smov 0   ;;  %s692_s10 = smov 0  }
   0x2   :  { %s694_s11 = smov 0   ;;  %s696_s12 = smov 0  }
   0x3   :  { %s698_s13 = smov 0   ;;  %s700_s14 = smov 0  }
   0x4   :  { %s702_s15 = smov 0   ;;  %s704_s16 = smov 0  }
   0x5 LB: > { %s476_s17 = sadd.s32 4294967295, %s668_s16   ;;  %s477_s18 = sadd.s32 4294967294, %s668_s16   ;;  %s668_s16 = sphi %s704_s16, %s15_s16   ;;  %s664_s15 = sphi %s702_s15, %s846_s15   ;;  %s660_s14 = sphi %s700_s14, %s845_s14   ;;  %s656_s13 = sphi %s698_s13, %s844_s13   ;;  %s652_s12 = sphi %s696_s12, %s843_s12   ;;  %s648_s11 = sphi %s694_s11, %s842_s11   ;;  %s644_s10 = sphi %s692_s10, %s841_s10   ;;  %s640_s9 = sphi %s690_s9, %s840_s9  }
   0x6   : > { %s24_s19 = sadd.s32 1, %s660_s14  ;;  %s27_s20 = sadd.s32 1, %s664_s15 }
   0x7   : > { %p25_p0 = scmp.ge.s32.totalorder %s24_s19, 2  ;;  %p43_p1 = scmp.ne.s32.totalorder %s648_s11, %s644_s10 }
   0x8   : > { %p44_p2 = scmp.eq.s32.totalorder %s668_s16, 0  ;;  %p103_p5 = scmp.eq.s32.totalorder %s476_s17, 3 }
   0x9   : > { %s848_s19 = smov (%p25_p0, %s24_s19), 0  ;;  %s850_s20 = smov (!%p25_p0, %s27_s20), %s664_s15 }
   0xa   : > { %s32_s21 = ssub.s32 %s660_s14, %s848_s19  ;;  %p742_p3 = por %p44_p2, %p43_p1 }
   0xb   : > { %p29_p4 = scmp.ge.s32.totalorder %s850_s20, 2  ;;  %p108_p6 = scmp.ne.s32.totalorder %s644_s10, %s640_s9 }
   0xc   : > { %p109_p7 = scmp.eq.s32.totalorder %s477_s18, 3  ;;  %p750_p8 = por %p103_p5, %p43_p1 }
   0xd   : > { %s852_s20 = smov (%p29_p4, %s850_s20), 0  ;;  %s36_s27 = sadd.s32 1, %s648_s11 }
   0xe   : > { %p754_p9 = por %p109_p7, %p108_p6  ;;  %s31_s25 = ssub.s32 %s664_s15, %s852_s20 }
   0xf   : > { %s33_s26 = sor.u32 %s32_s21, %s31_s25  ;;  %p479_p11 = scmp.ge.s32.totalorder %s668_s16, 4 }
  0x10   : > { %p34_p10 = scmp.eq.s32.totalorder %s33_s26, 0 }
  0x11   : > { %125 = sbr.rel (%p479_p11) target bundleno = 42 (0x2a), region = 16 }
  0x12   : > { %s762_s28 = scalar_select %p34_p10, %s648_s11, %s36_s27  }
  0x16   : > { %128 = sbr.rel (!%p742_p3) target bundleno = 32 (0x20), region = 20  ;;  %s130_s29 = sand.u32 (%p742_p3), 1, %s648_s11  }
  0x17   : > { %s494_s30 = smul.u32 (%p742_p3), 6, %s664_s15 }
  0x18   : > { %s493_s3 = smul.u32 (%p742_p3), 24, %s130_s29 }
  0x19   : > { %s134_s4 = sadd.s32 (%p742_p3), %s660_s14, %s494_s30 }
  0x1a   : > { %s480_s5 = sshll.u32 (%p742_p3), %s134_s4, 3  ;;  %s132_s17 = scalar_lea.vmem (%p742_p3), [#allocation3], %s493_s3 }
  0x1b   : > { %s136_s8 = scalar_lea.vmem %s834_s0, %s480_s5 }
  0x1c   : > { %v169_v0 = vld [vmem:[%s136_s8] sm:$0xff]  ;;  %v171_v1 = vld [vmem:[%s136_s8 + $0x10] sm:$0xff] }
  0x1d   : > { %v173_v2 = vld [vmem:[%s136_s8 + $0x20] sm:$0xff]  ;;  %170 = vst [vmem:[%s132_s17] sm:$0xff] %v169_v0 }
  0x1e   : > { %172 = vst [vmem:[%s132_s17 + $0x8] sm:$0xff] %v171_v1 }
  0x1f   : > { %174 = vst [vmem:[%s132_s17 + $0x10] sm:$0xff] %v173_v2 }
  0x20 PF: > { %180 = sbr.rel (!%p742_p3) target bundleno = 42 (0x2a), region = 58  ;;  %s182_s18 = sand.u32 (%p742_p3), 1, %s648_s11  }
  0x21   : > { %s496_s21 = smul.u32 (%p742_p3), 6, %s664_s15 }
  0x22   : > { %s495_s25 = smul.u32 (%p742_p3), 24, %s182_s18 }
  0x23   : > { %s186_s26 = sadd.s32 (%p742_p3), %s660_s14, %s496_s21 }
  0x24   : > { %s481_s27 = sshll.u32 (%p742_p3), %s186_s26, 3  ;;  %s184_s3 = scalar_lea.vmem (%p742_p3), [#allocation4], %s495_s25 }
  0x25   : > { %s188_s4 = scalar_lea.vmem %s835_s1, %s481_s27 }
  0x26   : > { %v221_v3 = vld [vmem:[%s188_s4] sm:$0xff]  ;;  %v223_v4 = vld [vmem:[%s188_s4 + $0x10] sm:$0xff] }
  0x27   : > { %v225_v5 = vld [vmem:[%s188_s4 + $0x20] sm:$0xff]  ;;  %222 = vst [vmem:[%s184_s3] sm:$0xff] %v221_v3 }
  0x28   : > { %224 = vst [vmem:[%s184_s3 + $0x8] sm:$0xff] %v223_v4 }
  0x29   : > { %226 = vst [vmem:[%s184_s3 + $0x10] sm:$0xff] %v225_v5 }
  0x2a PF: > { %p482_p12 = scmp.ge.s32.totalorder %s668_s16, 1  ;;  %p231_p13 = scmp.lt.s32.totalorder %s668_s16, 5 }
  0x2c   : > { %p232_p0 = pnand %p482_p12, %p231_p13 }
  0x2d   : > { %s784_s22 = sand.u32 (!%p232_p0), 1, %s644_s10   ;;  %s671_s8 = smov (!%p232_p0), 127  }
  0x2e   : > { %235 = sbr.rel (%p232_p0) target bundleno = 335 (0x14f), region = 96  ;;  %s672_s17 = smov (!%p232_p0), 1  }
  0x2f   : > { %s497_s5 = smul.u32 (!%p232_p0), 24, %s784_s22  ;;  %s673_s18 = smov (!%p232_p0), 126  }
  0x30   : > { %s674_s21 = smov (!%p232_p0), 2   ;;  %s489_s25 = sshll.u32 (!%p232_p0), %s656_s13, 1 }
  0x31   : > { %s240_s6 = scalar_lea.vmem (!%p232_p0), [#allocation3], %s497_s5  ;;  %s247_s7 = scalar_lea.vmem (!%p232_p0), [#allocation4], %s497_s5 }
  0x32   : > { %s369_s26 = sadd.s32 (!%p232_p0), %s652_s12, %s489_s25  ;;  %s483_s27 = sshll.u32 (!%p232_p0), %s784_s22, 3 }
  0x33   : > { %vm290_vm0 = vcmask 123904   ;;  %v670_v6 = vmov inf   ;;  %v270_v7 = vld [vmem:[%s240_s6] sm:$0xff]  ;;  %v271_v8 = vld [vmem:[%s247_s7] sm:$0x3f]  ;;  %v484_v9 = vld [vmem:[%s240_s6 + $0x8] sm:$0xff] }
  0x34   : > { %291 = vst.msk [vmem:[#allocation2 + $0xe] sm:$0x3] %vm290_vm0, %v670_v6  ;;  %v274_v10 = vmin.f32 %v270_v7, %v484_v9  ;;  %v485_v11 = vld [vmem:[%s247_s7 + $0x8] sm:$0x3f]  ;;  %v486_v12 = vld [vmem:[%s240_s6 + $0x10] sm:$0xff]  ;;  %vm286_vm1 = vcmask 130048  }
  0x35   : > { %v487_v13 = vld [vmem:[%s247_s7 + $0x10] sm:$0x3f]  ;;  %v277_v14 = vmin.f32 %v271_v8, %v485_v11  ;;  %vm284_vm2 = vcmask 124928   ;;  %vm292_vm3 = vcmask 1047680   ;;  %vm288_vm4 = vcmask 128003   ;;  %s490_s29 = sshll.u32 %s369_s26, 3 }
  0x36   : > { %v280_v15 = vmin.f32 %v274_v10, %v486_v12  ;;  %vm323_vm5 = vcmask 1046528   ;;  %vm342_vm6 = vcmask 1045504   ;;  %s371_s3 = scalar_lea.hbm %s836_s2, %s490_s29  ;;  %s269_s13 = scalar_lea.vmem [#allocation5], %s483_s27 }
  0x37   : > { %v283_v16 = vmin.f32 %v277_v14, %v487_v13  ;;  %s373_s12 = sshll.u32 %s269_s13, 4  ;;  %s375_s5 = sshll.u32 %s371_s3, 4  ;;  %s374_s12 = int_to_ptr.vmem [resolvable:$true] %s373_s12  ;;  %s376_s5 = int_to_ptr.hbm [resolvable:$true] %s375_s5 }
  0x38   : > { %287 = vst.msk [vmem:[#allocation2 + $0x3] sm:$0xff] %vm286_vm1, %v280_v15  ;;  %s359_s6 = scalar_lea.sflag [#allocation6], %s784_s22  ;;  %s588_s7 = sshra.s32 %s376_s5, 4  ;;  %s589_s7 = int_to_ptr.hbm [resolvable:$true] %s588_s7 }
  0x39   : > { %285 = vst.msk [vmem:[#allocation2] sm:$0x7] %vm284_vm2, %v283_v16  ;;  %p595_p4 = scmp.lt.s32.totalorder %s589_s7, %s836_s2 }
  0x3a   : > { %293 = vst.msk [vmem:[#allocation2] sm:$0xff] %vm292_vm3, %v670_v6 }
  0x3b   : > { %289 = vst.msk [vmem:[#allocation2 + $0x8] sm:$0x38] %vm288_vm4, %v283_v16 }
  0x3c   : > { %294 = vst.msk [vmem:[#allocation2 + $0x8] sm:$0xff] %vm292_vm3, %v670_v6 }
  0x41   : > { %v295_v17 = vld [vmem:[#allocation2] sm:$0xff] }
  0x42   : > { %301 = vrot.lane.b32.xlu1 %v295_v17, %s671_s8  ;;  %297 = vrot.lane.b32.xlu0 %v295_v17, %s672_s17 }
  0x43   : > { %v296_v18 = vld [vmem:[#allocation2 + $0x8] sm:$0xff] }
  0x4a   : > { %303 = vrot.lane.b32.xlu1 %v296_v18, %s671_s8  ;;  %299 = vrot.lane.b32.xlu0 %v296_v18, %s672_s17  ;;  %s590_s8 = scalar_lea.hbm %s589_s7, 8 }
  0x4b   : > { %p591_p1 = scmp.ne.s32.totalorder %s589_s7, %s590_s8 }
  0x4d   : > { %p592_p2 = pnand %p591_p1, %p750_p8 }
  0x4f   : > { %p593_p3 = pneg %p592_p2 }
  0xb4   : > { %v302_v19 = vpop.permute.xlu1 %301  ;;  %v298_v20 = vpop.permute.xlu0 %297 }
  0xb5   : > { %v305_v21 = vmin.f32 %v298_v20, %v302_v19 }
  0xb7   : > { %v307_v22 = vmin.f32 %v295_v17, %v305_v21 }
  0xb9   : > { %313 = vrot.lane.b32.xlu0 %v307_v22, %s673_s18  ;;  %309 = vrot.lane.b32.xlu2 %v307_v22, %s674_s21 }
  0xbc   : > { %v304_v23 = vpop.permute.xlu1 %303  ;;  %v300_v24 = vpop.permute.xlu0 %299 }
  0xbd   : > { %v306_v25 = vmin.f32 %v300_v24, %v304_v23 }
  0xbf   : > { %v308_v26 = vmin.f32 %v296_v18, %v306_v25 }
  0xc1   : > { %315 = vrot.lane.b32.xlu1 %v308_v26, %s673_s18  ;;  %311 = vrot.lane.b32.xlu2 %v308_v26, %s674_s21  ;;  %s594_s21 = scalar_lea.hbm %s836_s2, 32 }
  0xc2   : > { %p596_p5 = scmp.lt.s32.totalorder %s594_s21, %s590_s8 }
  0xc4   : > { %p597_p6 = por %p596_p5, %p595_p4 }
  0xc6   : > { %p598_p7 = pnand %p597_p6, %p593_p3 }
 0x113   : > { %v310_v27 = vpop.permute.xlu2 %309 }
 0x11b   : > { %v312_v30 = vpop.permute.xlu2 %311 }
 0x12b   : > { %v314_v28 = vpop.permute.xlu0 %313 }
 0x12c   : > { %v317_v29 = vmin.f32 %v310_v27, %v314_v28 }
 0x12e   : > { %v319_v32 = vmin.f32 %v307_v22, %v317_v29 }
 0x130   : > { %v324_v35 = vrot.slane %v319_v32, 1 }
 0x133   : > { %v316_v31 = vpop.permute.xlu1 %315 }
 0x134   : > { %v318_v33 = vmin.f32 %v312_v30, %v316_v31 }
 0x136   : > { %v320_v34 = vmin.f32 %v308_v26, %v318_v33 }
 0x138   : > { %v325_v36 = vrot.slane %v320_v34, 1 }
 0x13a   : > { %v326_v37 = vsel %vm323_vm5, %v324_v35, %v325_v36  ;;  %v330_v38 = vmin.f32 %v320_v34, %v325_v36 }
 0x13b   : > { %v329_v39 = vmin.f32 %v319_v32, %v326_v37 }
 0x13c   : > { %v334_v40 = vrot.slane %v330_v38, 1 }
 0x13d   : > { %v333_v41 = vrot.slane %v329_v39, 1 }
 0x13e   : > { %v339_v42 = vmin.f32 %v320_v34, %v334_v40 }
 0x13f   : > { %v335_v43 = vsel %vm323_vm5, %v333_v41, %v334_v40 }
 0x140   : > { %v344_v44 = vrot.slane %v339_v42, 2  ;;  %v338_v45 = vmin.f32 %v319_v32, %v335_v43 }
 0x142   : > { %v343_v46 = vrot.slane %v338_v45, 2  ;;  %v349_v47 = vmin.f32 %v339_v42, %v344_v44 }
 0x144   : > { %v345_v48 = vsel %vm342_vm6, %v343_v46, %v344_v44  ;;  %v353_v50 = vrot.slane %v349_v47, 2 }
 0x145   : > { %v348_v49 = vmin.f32 %v338_v45, %v345_v48 }
 0x147   : > { %v352_v51 = vrot.slane %v348_v49, 2 }
 0x149   : > { %v354_v52 = vsel %vm342_vm6, %v352_v51, %v353_v50 }
 0x14a   : > { %v356_v53 = vmin.f32 %v338_v45, %v354_v52 }
 0x14c   : > { %357 = vst.msk [vmem:[%s269_s13] sm:$0xff] %vm286_vm1, %v356_v53 }
 0x14d   : > { %601 = shalt.err (!%p598_p7)
}
 0x14e   : > { %498 = dma.vmem_to_hbm [thread:$0]  (%p750_p8), %s374_s12, 128, %s376_s5, %s359_s6  }
 0x14f PF: > { %p504_p10 = scmp.ge.s32.totalorder %s668_s16, 2  ;;  %s387_s22 = sand.u32 1, %s640_s9  }
 0x150   : > { %s388_s27 = scalar_lea.sflag [#allocation6], %s387_s22 }
 0x151   : > { %p501_p11 = pnand %p504_p10, %p754_p9 }
 0x153   : > { %p502_p12 = pneg %p501_p11 }
 0x155   : > { %635 = dma.done.wait (%p502_p12), %s388_s27, 128  }
 0x156   : > { %637 = vsyncadd (%p502_p12), %s388_s27, 4294967168  ;;  %s15_s16 = sadd.s32 1, %s668_s16   ;;  %s840_s9 = smov %s644_s10 }
 0x157   : > { %p12_p13 = scmp.ge.s32.totalorder %s15_s16, 6   ;;  %s841_s10 = smov %s648_s11 }
 0x158   : > { %s842_s11 = smov %s762_s28  ;;  %s843_s12 = smov %s660_s14 }
 0x159   : > { %s844_s13 = smov %s664_s15  ;;  %s845_s14 = smov %s848_s19 }
 0x15a   : > { %s846_s15 = smov %s852_s20  ;;  %14 = sbr.rel (!%p12_p13) target bundleno = 5 (0x5), region = 156 }
 0x15f   :  { %394 = vsyncpa [#allocation6], 1 }
 0x160   :  { %396 = vsyncpa [#allocation6 + $0x1], 1 }

</bundles_post_ra>
